<compile_context>
chip_gen: v6e
topology: v6e:2x2x1
jax: 0.10.0
libtpu: 0.0.40
codegen_flags: <defaults>
</compile_context>

<pallas_src>
import functools

import jax
import jax.numpy as jnp
from jax import lax
from jax.experimental import pallas as pl
from jax.experimental.pallas import tpu as pltpu


def _round_up(x, m):
    return ((x + m - 1) // m) * m


# ----------------------------------------------------------------------------
# Fused kernel: tiled spatial reduction + fc/ReLU + one fused 4-head matmul
# ----------------------------------------------------------------------------
def _attention_kernel(x_ref, fcw_ref, hw_ref, hb_ref, out_ref, acc_ref, *,
                      ts, hw_len, n0, knum, inv_hw, inv_temp, needs_mask):
    s = pl.program_id(0)

    @pl.when(s == 0)
    def _():
        acc_ref[...] = jnp.zeros_like(acc_ref)

    # Hot loop: lane-aligned 128-wide partial sums (pure VPU adds, hidden under
    # the streaming DMA).  The cross-lane collapse happens once in the epilogue.
    for j in range(ts // 128):
        chunk = x_ref[..., j * 128:(j + 1) * 128].astype(jnp.float32)
        if needs_mask:
            lane = lax.broadcasted_iota(jnp.int32, (1, 1, 128), 2)
            pos = s * ts + j * 128 + lane
            chunk = jnp.where(pos < hw_len, chunk, 0.0)
        acc_ref[...] += chunk

    @pl.when(s == pl.num_programs(0) - 1)
    def _():
        # Adaptive average pool -> [B, Cin]; bf16 for the MXU, f32 accumulate.
        pooled = (jnp.sum(acc_ref[...], axis=-1) * inv_hw).astype(jnp.bfloat16)

        # fc (1x1 conv, no bias) + ReLU.
        a = jnp.dot(pooled, fcw_ref[...], preferred_element_type=jnp.float32)
        a = jnp.maximum(a, 0.0).astype(jnp.bfloat16)

        # One fused matmul for all four heads (lane-dense, 128-multiple N).
        z = jnp.dot(a, hw_ref[...], preferred_element_type=jnp.float32)
        z = (z + hb_ref[...]) * inv_temp

        # Sigmoid for channel / filter / spatial heads (EUP reciprocal).
        sig = pl.reciprocal(1.0 + jnp.exp(-z), approx=True)

        # Masked, max-stabilized softmax over the kernel-attention columns.
        col = lax.broadcasted_iota(jnp.int32, z.shape, 1)
        ke_mask = (col >= n0) & (col < n0 + knum)
        m = jnp.max(jnp.where(ke_mask, z, -jnp.inf), axis=-1, keepdims=True)
        e = jnp.where(ke_mask, jnp.exp(z - m), 0.0)
        denom = jnp.sum(e, axis=-1, keepdims=True)
        soft = e * pl.reciprocal(denom, approx=True)

        # Single lane-dense (B, Npad) store; wrapper slices the four heads.
        out_ref[...] = jnp.where(ke_mask, soft, sig)


def attention_forward(x, params, *, in_planes, out_planes, kernel_size,
                      kernel_num, temperature=1.0):
    """Pallas forward pass of the ODConv Attention module.

    x: [B, in_planes, H, W] (NCHW, PyTorch convention), f32 or bf16.
    Returns (channel, filter, spatial, kernel) attentions with the same view
    shapes as the PyTorch module.
    """
    B, Cin, H, W = x.shape
    assert Cin == in_planes
    HW = H * W
    ks2 = kernel_size * kernel_size
    n0 = in_planes + out_planes + ks2
    n_total = n0 + kernel_num
    att = params['fc_w'].shape[1]
    n_pad = params['heads_w'].shape[1]

    # VMEM-budget-derived spatial tile: double-buffered input block <= ~16 MiB
    # (safe on v5e/v6e and the smaller-VMEM v7x).  No host-side padding of x.
    dtype_bytes = jnp.dtype(x.dtype).itemsize
    ts_cap = (16 * 1024 * 1024) // (2 * B * Cin * dtype_bytes)
    ts_cap = max(128, (ts_cap // 128) * 128)
    TS = min(ts_cap, _round_up(HW, 128))
    n_steps = int(pl.cdiv(HW, TS))
    needs_mask = (n_steps * TS != HW)

    x3 = x.reshape(B, Cin, HW)          # pure reshape: no transpose, no pad

    kernel = functools.partial(
        _attention_kernel, ts=TS, hw_len=HW, n0=n0, knum=kernel_num,
        inv_hw=1.0 / HW, inv_temp=1.0 / temperature, needs_mask=needs_mask)

    full2 = lambda s: (0, 0)

    out = pl.pallas_call(
        kernel,
        out_shape=jax.ShapeDtypeStruct((B, n_pad), jnp.float32),
        grid_spec=pltpu.PrefetchScalarGridSpec(
            num_scalar_prefetch=0,
            grid=(n_steps,),
            in_specs=[
                pl.BlockSpec((B, Cin, TS), lambda s: (0, 0, s)),
                pl.BlockSpec((Cin, att), full2),
                pl.BlockSpec((att, n_pad), full2),
                pl.BlockSpec((1, n_pad), full2),
            ],
            out_specs=pl.BlockSpec((B, n_pad), full2),
            scratch_shapes=[pltpu.VMEM((B, Cin, 128), jnp.float32)],
        ),
        compiler_params=pltpu.CompilerParams(
            dimension_semantics=("arbitrary",),
            vmem_limit_bytes=32 * 1024 * 1024),
    )(x3, params['fc_w'], params['heads_w'], params['heads_b'])

    channel_att = out[:, :in_planes].reshape(B, in_planes, 1, 1)
    filter_att = out[:, in_planes:in_planes + out_planes].reshape(
        B, out_planes, 1, 1)
    spatial_att = out[:, in_planes + out_planes:n0].reshape(
        B, 1, 1, 1, kernel_size, kernel_size)
    kernel_att = out[:, n0:n_total].reshape(B, kernel_num, 1, 1, 1, 1)
    return channel_att, filter_att, spatial_att, kernel_att


# ----------------------------------------------------------------------------
# Parameters (match PyTorch _initialize_weights: kaiming_normal fan_out, bias 0)
# The four head weights are concatenated host-side into one (att, Npad) bf16
# matrix (zero-padded to a 128-multiple) plus one f32 bias row.
# ----------------------------------------------------------------------------
def make_attention_params(key, in_planes, out_planes, kernel_size,
                          reduction=0.0625, kernel_num=4, min_channel=16):
    att = max(int(in_planes * reduction), min_channel)
    ks2 = kernel_size * kernel_size
    n_total = in_planes + out_planes + ks2 + kernel_num
    n_pad = _round_up(n_total, 128)

    def conv1x1(k, cout, cin):
        std = (2.0 / cout) ** 0.5        # kaiming_normal_, mode='fan_out', k=1
        return std * jax.random.normal(k, (cout, cin), jnp.float32)

    ks = [jax.random.fold_in(key, i) for i in range(5)]
    fc_w = conv1x1(ks[0], att, in_planes)                   # fc (no bias)
    ch_w = conv1x1(ks[1], in_planes, att)                   # channel_fc
    fi_w = conv1x1(ks[2], out_planes, att)                  # filter_fc
    sp_w = conv1x1(ks[3], ks2, att)                         # spatial_fc
    ke_w = conv1x1(ks[4], kernel_num, att)                  # kernel_fc

    heads_w = jnp.concatenate([ch_w, fi_w, sp_w, ke_w], axis=0).T  # (att, Ntot)
    heads_w = jnp.pad(heads_w, ((0, 0), (0, n_pad - n_total)))
    heads_b = jnp.zeros((1, n_pad), jnp.float32)            # all biases init 0

    return {
        'fc_w': fc_w.T.astype(jnp.bfloat16),      # (in_planes, att)
        'heads_w': heads_w.astype(jnp.bfloat16),  # (att, n_pad)
        'heads_b': heads_b,                       # (1, n_pad) f32
    }


def attention_reference(x, params, *, in_planes, out_planes, kernel_size,
                        kernel_num, temperature=1.0):
    """Pure-JAX f32 reference (same bf16-rounded weights)."""
    B = x.shape[0]
    ks2 = kernel_size * kernel_size
    n0 = in_planes + out_planes + ks2
    pooled = x.astype(jnp.float32).mean(axis=(2, 3))
    a = jnp.maximum(pooled @ params['fc_w'].astype(jnp.float32), 0.0)
    z = (a @ params['heads_w'].astype(jnp.float32)
         + params['heads_b']) / temperature
    ch = jax.nn.sigmoid(z[:, :in_planes])
    fi = jax.nn.sigmoid(z[:, in_planes:in_planes + out_planes])
    sp = jax.nn.sigmoid(z[:, in_planes + out_planes:n0])
    ke = jax.nn.softmax(z[:, n0:n0 + kernel_num], axis=-1)
    return (ch.reshape(B, in_planes, 1, 1),
            fi.reshape(B, out_planes, 1, 1),
            sp.reshape(B, 1, 1, 1, kernel_size, kernel_size),
            ke.reshape(B, kernel_num, 1, 1, 1, 1))


# ----------------------------------------------------------------------------
if __name__ == "__main__":
    key = jax.random.PRNGKey(0)
    in_planes, out_planes, kernel_size, kernel_num = 64, 64, 3, 4

    params = make_attention_params(jax.random.fold_in(key, 1),
                                   in_planes, out_planes, kernel_size,
                                   kernel_num=kernel_num)
    x = jax.random.normal(jax.random.fold_in(key, 2),
                          (2, in_planes, 16, 16), jnp.float32)

    fwd = jax.jit(functools.partial(
        attention_forward, in_planes=in_planes, out_planes=out_planes,
        kernel_size=kernel_size, kernel_num=kernel_num, temperature=1.0))
    outs = jax.block_until_ready(fwd(x, params))
    ch, fi, sp, ke = outs

    assert ch.shape == (2, in_planes, 1, 1), ch.shape
    assert fi.shape == (2, out_planes, 1, 1), fi.shape
    assert sp.shape == (2, 1, 1, 1, kernel_size, kernel_size), sp.shape
    assert ke.shape == (2, kernel_num, 1, 1, 1, 1), ke.shape
    for o in outs:
        assert bool(jnp.all(jnp.isfinite(o)))

    # Correctness vs the f32 reference (tolerance covers the bf16 MXU inputs
    # and the approx EUP reciprocals).
    refs = attention_reference(x, params, in_planes=in_planes,
                               out_planes=out_planes, kernel_size=kernel_size,
                               kernel_num=kernel_num, temperature=1.0)
    for got, ref in zip(outs, refs):
        assert float(jnp.max(jnp.abs(got - ref))) < 1e-2

    print("KERNEL_OK")
</pallas_src>

<mosaic_0001>
module attributes {stable_mosaic.version = 11 : i64} {
  func.func @_attention_kernel(%arg0: i32, %arg1: memref<2x64x256xf32, #tpu.memory_space<vmem>>, %arg2: memref<64x16xbf16, #tpu.memory_space<vmem>>, %arg3: memref<16x256xbf16, #tpu.memory_space<vmem>>, %arg4: memref<1x256xf32, #tpu.memory_space<vmem>>, %arg5: memref<2x256xf32, #tpu.memory_space<vmem>>, %arg6: memref<2x64x128xf32, #tpu.memory_space<vmem>>) attributes {dimension_semantics = [#tpu.dimension_semantics<arbitrary>], iteration_bounds = array<i64: 1>, scalar_prefetch = 0 : i64, scratch_operands = 1 : i64, tpu.core_type = #tpu.core_type<tc>, window_params = [{transform_indices = @transform_0, window_bounds = array<i64: 2, 64, 256>}, {pipeline_mode = #tpu.pipeline_mode<synchronous>, transform_indices = @transform_1, window_bounds = array<i64: 64, 16>}, {pipeline_mode = #tpu.pipeline_mode<synchronous>, transform_indices = @transform_2, window_bounds = array<i64: 16, 256>}, {pipeline_mode = #tpu.pipeline_mode<synchronous>, transform_indices = @transform_3, window_bounds = array<i64: 1, 256>}, {pipeline_mode = #tpu.pipeline_mode<synchronous>, transform_indices = @transform_4, window_bounds = array<i64: 2, 256>}]} {
    %c0_i32 = arith.constant 0 : i32
    %0 = arith.cmpi eq, %arg0, %c0_i32 : i32
    %1 = arith.extui %0 : i1 to i32
    %c0_i32_0 = arith.constant 0 : i32
    %2 = arith.cmpi ne, %1, %c0_i32_0 : i32
    scf.if %2 {
      %cst = arith.constant 0.000000e+00 : f32
      %14 = vector.broadcast %cst : f32 to vector<2x64x128xf32>
      %c0_19 = arith.constant 0 : index
      %c0_20 = arith.constant 0 : index
      %c0_21 = arith.constant 0 : index
      %15 = vector.load %arg6[%c0_19, %c0_20, %c0_21] : memref<2x64x128xf32, #tpu.memory_space<vmem>>, vector<2x64x128xf32>
      tpu.vector_store %arg6[%c0_19, %c0_20, %c0_21], %14 {strides = array<i32>} : memref<2x64x128xf32, #tpu.memory_space<vmem>>, vector<2x64x128xf32>,
    } else {
    }
    %c0 = arith.constant 0 : index
    %c0_1 = arith.constant 0 : index
    %c0_2 = arith.constant 0 : index
    %3 = vector.load %arg1[%c0, %c0_1, %c0_2] : memref<2x64x256xf32, #tpu.memory_space<vmem>>, vector<2x64x128xf32>
    %c0_3 = arith.constant 0 : index
    %c0_4 = arith.constant 0 : index
    %c0_5 = arith.constant 0 : index
    %4 = vector.load %arg6[%c0_3, %c0_4, %c0_5] : memref<2x64x128xf32, #tpu.memory_space<vmem>>, vector<2x64x128xf32>
    %5 = arith.addf %4, %3 : vector<2x64x128xf32>
    %c0_6 = arith.constant 0 : index
    %c0_7 = arith.constant 0 : index
    %c0_8 = arith.constant 0 : index
    %6 = vector.load %arg6[%c0_6, %c0_7, %c0_8] : memref<2x64x128xf32, #tpu.memory_space<vmem>>, vector<2x64x128xf32>
    tpu.vector_store %arg6[%c0_6, %c0_7, %c0_8], %5 {strides = array<i32>} : memref<2x64x128xf32, #tpu.memory_space<vmem>>, vector<2x64x128xf32>,
    %c0_9 = arith.constant 0 : index
    %c0_10 = arith.constant 0 : index
    %c128 = arith.constant 128 : index
    %7 = vector.load %arg1[%c0_9, %c0_10, %c128] : memref<2x64x256xf32, #tpu.memory_space<vmem>>, vector<2x64x128xf32>
    %c0_11 = arith.constant 0 : index
    %c0_12 = arith.constant 0 : index
    %c0_13 = arith.constant 0 : index
    %8 = vector.load %arg6[%c0_11, %c0_12, %c0_13] : memref<2x64x128xf32, #tpu.memory_space<vmem>>, vector<2x64x128xf32>
    %9 = arith.addf %8, %7 : vector<2x64x128xf32>
    %c0_14 = arith.constant 0 : index
    %c0_15 = arith.constant 0 : index
    %c0_16 = arith.constant 0 : index
    %10 = vector.load %arg6[%c0_14, %c0_15, %c0_16] : memref<2x64x128xf32, #tpu.memory_space<vmem>>, vector<2x64x128xf32>
    tpu.vector_store %arg6[%c0_14, %c0_15, %c0_16], %9 {strides = array<i32>} : memref<2x64x128xf32, #tpu.memory_space<vmem>>, vector<2x64x128xf32>,
    %c0_i32_17 = arith.constant 0 : i32
    %11 = arith.cmpi eq, %arg0, %c0_i32_17 : i32
    %12 = arith.extui %11 : i1 to i32
    %c0_i32_18 = arith.constant 0 : i32
    %13 = arith.cmpi ne, %12, %c0_i32_18 : i32
    scf.if %13 {
      %c0_19 = arith.constant 0 : index
      %c0_20 = arith.constant 0 : index
      %c0_21 = arith.constant 0 : index
      %14 = vector.load %arg6[%c0_19, %c0_20, %c0_21] : memref<2x64x128xf32, #tpu.memory_space<vmem>>, vector<2x64x128xf32>
      %cst = arith.constant dense<0.000000e+00> : vector<2x64xf32>
      %15 = vector.multi_reduction <add>, %14, %cst [2] : vector<2x64x128xf32> to vector<2x64xf32>
      %cst_22 = arith.constant 3.906250e-03 : f32
      %16 = vector.broadcast %cst_22 : f32 to vector<2x64xf32>
      %17 = arith.mulf %15, %16 : vector<2x64xf32>
      %18 = arith.truncf %17 : vector<2x64xf32> to vector<2x64xbf16>
      %c0_23 = arith.constant 0 : index
      %c0_24 = arith.constant 0 : index
      %19 = vector.load %arg2[%c0_23, %c0_24] : memref<64x16xbf16, #tpu.memory_space<vmem>>, vector<64x16xbf16>
      %cst_25 = arith.constant dense<0.000000e+00> : vector<2x16xf32>
      %20 = tpu.matmul %18, %19, %cst_25 {dimension_numbers = #tpu.dot_dimension_numbers<[1], [0], [0], [1], [0, 0, 1, 1], [], []>} : vector<2x64xbf16>, vector<64x16xbf16>, vector<2x16xf32> -> vector<2x16xf32>
      %cst_26 = arith.constant 0.000000e+00 : f32
      %21 = vector.broadcast %cst_26 : f32 to vector<2x16xf32>
      %22 = arith.maximumf %20, %21 : vector<2x16xf32>
      %23 = arith.truncf %22 : vector<2x16xf32> to vector<2x16xbf16>
      %c0_27 = arith.constant 0 : index
      %c0_28 = arith.constant 0 : index
      %24 = vector.load %arg3[%c0_27, %c0_28] : memref<16x256xbf16, #tpu.memory_space<vmem>>, vector<16x256xbf16>
      %cst_29 = arith.constant dense<0.000000e+00> : vector<2x256xf32>
      %25 = tpu.matmul %23, %24, %cst_29 {dimension_numbers = #tpu.dot_dimension_numbers<[1], [0], [0], [1], [0, 0, 1, 1], [], []>} : vector<2x16xbf16>, vector<16x256xbf16>, vector<2x256xf32> -> vector<2x256xf32>
      %c0_30 = arith.constant 0 : index
      %c0_31 = arith.constant 0 : index
      %26 = vector.load %arg4[%c0_30, %c0_31] : memref<1x256xf32, #tpu.memory_space<vmem>>, vector<1x256xf32>
      %27 = vector.broadcast %26 : vector<1x256xf32> to vector<2x256xf32>
      %28 = arith.addf %25, %27 : vector<2x256xf32>
      %cst_32 = arith.constant 1.000000e+00 : f32
      %29 = vector.broadcast %cst_32 : f32 to vector<2x256xf32>
      %30 = arith.mulf %28, %29 : vector<2x256xf32>
      %cst_33 = arith.constant 0.000000e+00 : f32
      %31 = vector.broadcast %cst_33 : f32 to vector<2x256xf32>
      %32 = arith.subf %31, %30 : vector<2x256xf32>
      %33 = math.exp %32 : vector<2x256xf32>
      %cst_34 = arith.constant 1.000000e+00 : f32
      %34 = vector.broadcast %cst_34 : f32 to vector<2x256xf32>
      %35 = arith.addf %34, %33 : vector<2x256xf32>
      %36 = tpu.reciprocal %35 {approx = true} : vector<2x256xf32> -> vector<2x256xf32>
      %37 = tpu.iota {dimensions = array<i32: 1>} : vector<2x256xi32>
      %c137_i32 = arith.constant 137 : i32
      %38 = vector.broadcast %c137_i32 : i32 to vector<2x256xi32>
      %39 = arith.cmpi sge, %37, %38 : vector<2x256xi32>
      %c141_i32 = arith.constant 141 : i32
      %40 = vector.broadcast %c141_i32 : i32 to vector<2x256xi32>
      %41 = arith.cmpi slt, %37, %40 : vector<2x256xi32>
      %42 = arith.andi %39, %41 : vector<2x256xi1>
      %cst_35 = arith.constant 0xFF800000 : f32
      %43 = vector.broadcast %cst_35 : f32 to vector<2x256xf32>
      %44 = arith.select %42, %30, %43 : vector<2x256xi1>, vector<2x256xf32>
      %cst_36 = arith.constant dense<0xFF800000> : vector<2xf32>
      %45 = vector.multi_reduction <maximumf>, %44, %cst_36 [1] : vector<2x256xf32> to vector<2xf32>
      %46 = vector.shape_cast %45 : vector<2xf32> to vector<2x1xf32>
      %47 = vector.broadcast %46 : vector<2x1xf32> to vector<2x256xf32>
      %48 = arith.subf %30, %47 : vector<2x256xf32>
      %49 = math.exp %48 : vector<2x256xf32>
      %cst_37 = arith.constant 0.000000e+00 : f32
      %50 = vector.broadcast %cst_37 : f32 to vector<2x256xf32>
      %51 = arith.select %42, %49, %50 : vector<2x256xi1>, vector<2x256xf32>
      %cst_38 = arith.constant dense<0.000000e+00> : vector<2xf32>
      %52 = vector.multi_reduction <add>, %51, %cst_38 [1] : vector<2x256xf32> to vector<2xf32>
      %53 = vector.shape_cast %52 : vector<2xf32> to vector<2x1xf32>
      %54 = tpu.reciprocal %53 {approx = true} : vector<2x1xf32> -> vector<2x1xf32>
      %55 = vector.broadcast %54 : vector<2x1xf32> to vector<2x256xf32>
      %56 = arith.mulf %51, %55 : vector<2x256xf32>
      %57 = arith.select %42, %56, %36 : vector<2x256xi1>, vector<2x256xf32>
      %c0_39 = arith.constant 0 : index
      %c0_40 = arith.constant 0 : index
      %58 = vector.load %arg5[%c0_39, %c0_40] : memref<2x256xf32, #tpu.memory_space<vmem>>, vector<2x256xf32>
      tpu.vector_store %arg5[%c0_39, %c0_40], %57 {strides = array<i32>} : memref<2x256xf32, #tpu.memory_space<vmem>>, vector<2x256xf32>,
    } else {
    }
    return
  }
  func.func @transform_0(%arg0: i32) -> (i32, i32, i32) {
    %c0_i32 = arith.constant 0 : i32
    %c0_i32_0 = arith.constant 0 : i32
    %c0_i32_1 = arith.constant 0 : i32
    return %c0_i32, %c0_i32_0, %arg0 : i32, i32, i32
  }
  func.func @transform_1(%arg0: i32) -> (i32, i32) {
    %c0_i32 = arith.constant 0 : i32
    %c0_i32_0 = arith.constant 0 : i32
    %c0_i32_1 = arith.constant 0 : i32
    return %c0_i32, %c0_i32_0 : i32, i32
  }
  func.func @transform_2(%arg0: i32) -> (i32, i32) {
    %c0_i32 = arith.constant 0 : i32
    %c0_i32_0 = arith.constant 0 : i32
    %c0_i32_1 = arith.constant 0 : i32
    return %c0_i32, %c0_i32_0 : i32, i32
  }
  func.func @transform_3(%arg0: i32) -> (i32, i32) {
    %c0_i32 = arith.constant 0 : i32
    %c0_i32_0 = arith.constant 0 : i32
    %c0_i32_1 = arith.constant 0 : i32
    return %c0_i32, %c0_i32_0 : i32, i32
  }
  func.func @transform_4(%arg0: i32) -> (i32, i32) {
    %c0_i32 = arith.constant 0 : i32
    %c0_i32_0 = arith.constant 0 : i32
    %c0_i32_1 = arith.constant 0 : i32
    return %c0_i32, %c0_i32_0 : i32, i32
  }
}

</mosaic_0001>

<bundles_post_ra>
// kernel: attention_forward.1
= control target key start
LH: loop header
LB: loop body
LE: loop exit
PB: predicated region body
PF: predicated region fallthrough
CT: control target
= control target key end

     0   :  { %v616_v49 = vmov 0.0   ;;  %vm617_vm0 = vmmov 0   ;;  %v273_v57 = vlaneseq  ;;  %vm284_vm1 = vcmask 130112   ;;  %s807_s0 = inlined_call_operand.vmem [shape: f32[2,64,256], index: 0, kind: input, shape index: {}]   ;;  %s808_s1 = inlined_call_operand.vmem [shape: bf16[64,16], index: 1, kind: input, shape index: {}]   ;;  %s809_s2 = inlined_call_operand.vmem [shape: bf16[16,256], index: 2, kind: input, shape index: {}]   ;;  %s810_s3 = inlined_call_operand.vmem [shape: f32[1,256], index: 3, kind: input, shape index: {}]   ;;  %s811_s4 = inlined_call_operand.vmem [shape: f32[2,256], index: 4, kind: output, shape index: {}]  }
   0x1   :  { %v46_v0 = vld [vmem:[%s807_s0 + $0x80] sm:$0xff]  ;;  %v110_v1 = vld [vmem:[%s807_s0 + $0x88] sm:$0xff]  ;;  %v47_v5 = vld [vmem:[%s807_s0 + $0x90] sm:$0xff]  ;;  %582 = vmatprep.subr.bf16.mxu0 %v616_v49  ;;  %590 = vmatprep.mubr.msk.bf16.mxu0 %vm617_vm0, %v616_v49  ;;  %vm291_vm2 = vcmask 195712   ;;  %vm298_vm3 = vcmask 261312   ;;  %vm305_vm4 = vcmask 326912  }
   0x2   :  { %v38_v2 = vld [vmem:[%s807_s0] sm:$0xff]  ;;  %v142_v3 = vadd.f32 %v110_v1, %v46_v0  ;;  %v102_v4 = vld [vmem:[%s807_s0 + $0x8] sm:$0xff]  ;;  %v111_v6 = vld [vmem:[%s807_s0 + $0x98] sm:$0xff]  ;;  %v752_v60 = vand.u32 127, %v273_v57  ;;  %vm312_vm5 = vcmask 392512   ;;  %vm319_vm6 = vcmask 458112  }
   0x3   :  { %v134_v7 = vadd.f32 %v102_v4, %v38_v2  ;;  %v39_v8 = vld [vmem:[%s807_s0 + $0x10] sm:$0xff]  ;;  %v103_v9 = vld [vmem:[%s807_s0 + $0x18] sm:$0xff]  ;;  %v143_v10 = vadd.f32 %v111_v6, %v47_v5  ;;  %v40_v14 = vld [vmem:[%s807_s0 + $0x20] sm:$0xff]  ;;  %v754_v4 = vshrl.u32 %v273_v57, 7  ;;  %vm326_vm7 = vcmask 523712  }
   0x4   :  { %201 = vadd.xlane.f32.xlu1 %v142_v3  ;;  %v135_v11 = vadd.f32 %v103_v9, %v39_v8  ;;  %v41_v12 = vld [vmem:[%s807_s0 + $0x30] sm:$0xff]  ;;  %v105_v13 = vld [vmem:[%s807_s0 + $0x38] sm:$0xff]  ;;  %v104_v15 = vld [vmem:[%s807_s0 + $0x28] sm:$0xff]  ;;  %v279_v8 = vadd.s32 4294967288, %v752_v60  ;;  %v321_v57 = vadd.s32 4294967240, %v752_v60  ;;  %vm367_vm8 = vcmask 1041409  }
   0x5   :  { %185 = vadd.xlane.f32.xlu0 %v134_v7  ;;  %v137_v16 = vadd.f32 %v105_v13, %v41_v12  ;;  %v136_v17 = vadd.f32 %v104_v15, %v40_v14  ;;  %v49_v18 = vld [vmem:[%s807_s0 + $0xb0] sm:$0xff]  ;;  %v113_v19 = vld [vmem:[%s807_s0 + $0xb8] sm:$0xff]  ;;  %v48_v20 = vld [vmem:[%s807_s0 + $0xa0] sm:$0xff]  ;;  %v293_v14 = vadd.s32 4294967272, %v752_v60  ;;  %vm394_vm9 = vcmask 523264  }
   0x6   :  { %v112_v21 = vld [vmem:[%s807_s0 + $0xa8] sm:$0xff]  ;;  %v145_v22 = vadd.f32 %v113_v19, %v49_v18  ;;  %v43_v24 = vld [vmem:[%s807_s0 + $0x50] sm:$0xff]  ;;  %v107_v25 = vld [vmem:[%s807_s0 + $0x58] sm:$0xff]  ;;  %v300_v19 = vadd.s32 4294967264, %v752_v60  ;;  %vm464_vm10 = vcmask 130048   ;;  %vm528_vm14 = vcmask 1041408  }
   0x7   :  { %v144_v23 = vadd.f32 %v112_v21, %v48_v20  ;;  %v42_v26 = vld [vmem:[%s807_s0 + $0x40] sm:$0xff]  ;;  %v106_v27 = vld [vmem:[%s807_s0 + $0x48] sm:$0xff]  ;;  %v139_v28 = vadd.f32 %v107_v25, %v43_v24  ;;  %v51_v30 = vld [vmem:[%s807_s0 + $0xd0] sm:$0xff]  ;;  %v282_v21 = vsub.s32 %v279_v8, %v754_v4  ;;  %v307_v24 = vadd.s32 4294967256, %v752_v60 }
   0x8   :  { %203 = vadd.xlane.f32.xlu1 %v143_v10  ;;  %v138_v29 = vadd.f32 %v106_v27, %v42_v26  ;;  %v115_v31 = vld [vmem:[%s807_s0 + $0xd8] sm:$0xff]  ;;  %v50_v32 = vld [vmem:[%s807_s0 + $0xc0] sm:$0xff]  ;;  %v114_v33 = vld [vmem:[%s807_s0 + $0xc8] sm:$0xff]  ;;  %v286_v10 = vadd.s32 4294967280, %v752_v60 }
   0x9   :  { %187 = vadd.xlane.f32.xlu0 %v135_v11  ;;  %v147_v34 = vadd.f32 %v115_v31, %v51_v30  ;;  %v146_v35 = vadd.f32 %v114_v33, %v50_v32  ;;  %v45_v36 = vld [vmem:[%s807_s0 + $0x70] sm:$0xff]  ;;  %v109_v37 = vld [vmem:[%s807_s0 + $0x78] sm:$0xff]  ;;  %v44_v38 = vld [vmem:[%s807_s0 + $0x60] sm:$0xff]  ;;  %v296_v31 = vsub.s32 %v293_v14, %v754_v4 }
   0xa   :  { %v108_v39 = vld [vmem:[%s807_s0 + $0x68] sm:$0xff]  ;;  %v141_v40 = vadd.f32 %v109_v37, %v45_v36  ;;  %v53_v42 = vld [vmem:[%s807_s0 + $0xf0] sm:$0xff]  ;;  %v117_v43 = vld [vmem:[%s807_s0 + $0xf8] sm:$0xff]  ;;  %v289_v25 = vsub.s32 %v286_v10, %v754_v4 }
   0xb   :  { %v140_v41 = vadd.f32 %v108_v39, %v44_v38  ;;  %v52_v44 = vld [vmem:[%s807_s0 + $0xe0] sm:$0xff]  ;;  %v116_v45 = vld [vmem:[%s807_s0 + $0xe8] sm:$0xff]  ;;  %v149_v46 = vadd.f32 %v117_v43, %v53_v42  ;;  %v597_v48 = vld [vmem:[%s808_s1 + $0x18] sm:$0xff]  }
   0xc   :  { %191 = vadd.xlane.f32.xlu1 %v137_v16  ;;  %v148_v47 = vadd.f32 %v116_v45, %v52_v44  ;;  %583 = vmatpush3.bf16.msra.mxu0 %v597_v48  ;;  %v598_v50 = vld [vmem:[%s808_s1 + $0x10] sm:$0xff]   ;;  %v599_v51 = vld [vmem:[%s808_s1 + $0x8] sm:$0xff]   ;;  %v600_v52 = vld [vmem:[%s808_s1] sm:$0xff]   ;;  %v314_v45 = vadd.s32 4294967248, %v752_v60 }
   0xd   :  { %189 = vadd.xlane.f32.xlu0 %v136_v17  ;;  %584 = vmatprep.subr.bf16.mxu0 %v616_v49  ;;  %v277_v17 = vsub.s32 %v752_v60, %v754_v4 }
  0x10   :  { %207 = vadd.xlane.f32.xlu1 %v145_v22  ;;  %585 = vmatpush3.bf16.msra.mxu0 %v598_v50 }
  0x11   :  { %205 = vadd.xlane.f32.xlu0 %v144_v23  ;;  %586 = vmatprep.subr.bf16.mxu0 %v616_v49 }
  0x14   :  { %195 = vadd.xlane.f32.xlu1 %v139_v28  ;;  %587 = vmatpush3.bf16.msra.mxu0 %v599_v51 }
  0x15   :  { %193 = vadd.xlane.f32.xlu0 %v138_v29  ;;  %588 = vmatprep.subr.bf16.mxu0 %v616_v49 }
  0x18   :  { %211 = vadd.xlane.f32.xlu1 %v147_v34  ;;  %589 = vmatpush3.bf16.msra.mxu0 %v600_v52 }
  0x19   :  { %209 = vadd.xlane.f32.xlu0 %v146_v35  ;;  %v303_v35 = vsub.s32 %v300_v19, %v754_v4 }
  0x1c   :  { %199 = vadd.xlane.f32.xlu1 %v141_v40  ;;  %v310_v40 = vsub.s32 %v307_v24, %v754_v4 }
  0x1d   :  { %197 = vadd.xlane.f32.xlu0 %v140_v41 }
  0x20   :  { %215 = vadd.xlane.f32.xlu1 %v149_v46 }
  0x21   :  { %213 = vadd.xlane.f32.xlu0 %v148_v47 }
  0x8d   :  { %v202_v53 = vpop.xlane.xlu1 %201 }
  0x8e   :  { %v186_v54 = vpop.xlane.xlu0 %185  ;;  %v225_v7 = vmul.f32 0.00390625, %v202_v53 }
  0x8f   :  { %v217_v1 = vmul.f32 0.00390625, %v186_v54 }
  0x91   :  { %v204_v55 = vpop.xlane.xlu1 %203 }
  0x92   :  { %v188_v56 = vpop.xlane.xlu0 %187  ;;  %v226_v2 = vmul.f32 0.00390625, %v204_v55 }
  0x93   :  { %v218_v61 = vmul.f32 0.00390625, %v188_v56 }
  0x94   :  { %v237_v13 = vpack.c.bf16 %v226_v2, %v225_v7 }
  0x95   :  { %v192_v58 = vpop.xlane.xlu1 %191  ;;  %v233_v9 = vpack.c.bf16 %v218_v61, %v217_v1  ;;  %v317_v61 = vsub.s32 %v314_v45, %v754_v4 }
  0x96   :  { %v190_v59 = vpop.xlane.xlu0 %189  ;;  %v220_v62 = vmul.f32 0.00390625, %v192_v58  ;;  %v265_v29 = vunpack.c.l.b16 %v237_v13  ;;  %v266_v30 = vunpack.c.h.b16 %v237_v13 }
  0x97   :  { %v219_v63 = vmul.f32 0.00390625, %v190_v59  ;;  %v257_v22 = vunpack.c.l.b16 %v233_v9  ;;  %v258_v23 = vunpack.c.h.b16 %v233_v9 }
  0x98   :  { %v331_v46 = vrot.slane %v265_v29, %v277_v17  ;;  %v335_v47 = vrot.slane %v266_v30, %v282_v21 }
  0x99   :  { %v208_v0 = vpop.xlane.xlu1 %207  ;;  %v234_v11 = vpack.c.bf16 %v220_v62, %v219_v63  ;;  %v278_v37 = vrot.slane %v257_v22, %v277_v17  ;;  %v283_v38 = vrot.slane %v258_v23, %v282_v21 }
  0x9a   :  { %v206_v3 = vpop.xlane.xlu0 %205  ;;  %v228_v5 = vmul.f32 0.00390625, %v208_v0  ;;  %v336_v0 = vsel %vm284_vm1, %v335_v47, %v331_v46 }
  0x9b   :  { %v227_v6 = vmul.f32 0.00390625, %v206_v3  ;;  %v259_v26 = vunpack.c.l.b16 %v234_v11  ;;  %v260_v39 = vunpack.c.h.b16 %v234_v11  ;;  %v285_v54 = vsel %vm284_vm1, %v283_v38, %v278_v37 }
  0x9d   :  { %v196_v12 = vpop.xlane.xlu1 %195  ;;  %v238_v18 = vpack.c.bf16 %v228_v5, %v227_v6  ;;  %v290_v41 = vrot.slane %v259_v26, %v289_v25  ;;  %v297_v55 = vrot.slane %v260_v39, %v296_v31 }
  0x9e   :  { %v222_v15 = vmul.f32 0.00390625, %v196_v12  ;;  %v194_v16 = vpop.xlane.xlu0 %193  ;;  %v324_v12 = vsub.s32 %v321_v57, %v754_v4 }
  0x9f   :  { %v221_v20 = vmul.f32 0.00390625, %v194_v16  ;;  %v267_v34 = vunpack.c.l.b16 %v238_v18  ;;  %v268_v48 = vunpack.c.h.b16 %v238_v18  ;;  %v292_v58 = vsel %vm291_vm2, %v290_v41, %v285_v54 }
  0xa0   :  { %v299_v10 = vsel %vm298_vm3, %v297_v55, %v292_v58 }
  0xa1   :  { %v235_v27 = vpack.c.bf16 %v222_v15, %v221_v20  ;;  %v212_v28 = vpop.xlane.xlu1 %211  ;;  %v340_v51 = vrot.slane %v267_v34, %v289_v25  ;;  %v345_v1 = vrot.slane %v268_v48, %v296_v31  ;;  %v603_v34 = vld [vmem:[%s809_s2] ss:$8 sps:$4 sm:$0xff]  }
  0xa2   :  { %v230_v32 = vmul.f32 0.00390625, %v212_v28  ;;  %v210_v33 = vpop.xlane.xlu0 %209 }
  0xa3   :  { %v229_v36 = vmul.f32 0.00390625, %v210_v33  ;;  %v261_v42 = vunpack.c.l.b16 %v235_v27  ;;  %v262_v56 = vunpack.c.h.b16 %v235_v27  ;;  %v341_v6 = vsel %vm291_vm2, %v340_v51, %v336_v0  ;;  %v601_v33 = vld [vmem:[%s809_s2 + $0x4] ss:$8 sps:$4 sm:$0xff]  }
  0xa4   :  { %v346_v17 = vsel %vm298_vm3, %v345_v1, %v341_v6  ;;  %482 = vmatprep.subr.bf16.mxu1 %v601_v33 }
  0xa5   :  { %v239_v43 = vpack.c.bf16 %v230_v32, %v229_v36  ;;  %v200_v44 = vpop.xlane.xlu1 %199  ;;  %v304_v59 = vrot.slane %v261_v42, %v303_v35  ;;  %v311_v11 = vrot.slane %v262_v56, %v310_v40  ;;  %483 = vmatpush1.bf16.msra.mxu1 %v603_v34  ;;  %v450_v42 = vsub.s32 1, %v754_v4 }
  0xa6   :  { %v224_v49 = vmul.f32 0.00390625, %v200_v44  ;;  %v198_v50 = vpop.xlane.xlu0 %197  ;;  %v442_v44 = vld [vmem:[%s810_s3] sm:$0x3] }
  0xa7   :  { %v269_v52 = vunpack.c.l.b16 %v239_v43  ;;  %v223_v53 = vmul.f32 0.00390625, %v198_v50  ;;  %v270_v2 = vunpack.c.h.b16 %v239_v43  ;;  %v306_v14 = vsel %vm305_vm4, %v304_v59, %v299_v10 }
  0xa8   :  { %v313_v22 = vsel %vm312_vm5, %v311_v11, %v306_v14  ;;  %v519_v43 = vadd.s32 128, %v752_v60  ;;  %v451_v45 = vrot.slane %v442_v44, %v450_v42  ;;  %v446_v59 = vsub.s32 0, %v754_v4 }
  0xa9   :  { %v236_v62 = vpack.c.bf16 %v224_v49, %v223_v53  ;;  %v216_v63 = vpop.xlane.xlu1 %215  ;;  %v350_v7 = vrot.slane %v269_v52, %v303_v35  ;;  %v355_v18 = vrot.slane %v270_v2, %v310_v40  ;;  %v618_v35 = vmov 0  }
  0xaa   :  { %v232_v3 = vmul.f32 0.00390625, %v216_v63  ;;  %v214_v5 = vpop.xlane.xlu0 %213  ;;  %500 = vmatprep.mubr.bf16.mxu1 %v618_v35  ;;  %vm521_vm11 = vcmp.ge.s32.totalorder %v519_v43, 137  ;;  %vm523_vm12 = vcmp.lt.s32.totalorder %v519_v43, 141 }
  0xab   :  { %v263_v8 = vunpack.c.l.b16 %v236_v62  ;;  %v231_v9 = vmul.f32 0.00390625, %v214_v5  ;;  %v264_v13 = vunpack.c.h.b16 %v236_v62  ;;  %v351_v19 = vsel %vm305_vm4, %v350_v7, %v346_v17  ;;  %vm793_vm13 = vmand %vm521_vm11, %vm523_vm12 }
  0xac   :  { %v356_v27 = vsel %vm312_vm5, %v355_v18, %v351_v19 }
  0xad   :  { %v318_v15 = vrot.slane %v263_v8, %v317_v61  ;;  %v240_v16 = vpack.c.bf16 %v232_v3, %v231_v9  ;;  %v325_v23 = vrot.slane %v264_v13, %v324_v12 }
  0xaf   :  { %v271_v20 = vunpack.c.l.b16 %v240_v16  ;;  %v272_v21 = vunpack.c.h.b16 %v240_v16  ;;  %v320_v24 = vsel %vm319_vm6, %v318_v15, %v313_v22 }
  0xb0   :  { %v327_v29 = vsel %vm326_vm7, %v325_v23, %v320_v24 }
  0xb1   :  { %v360_v25 = vrot.slane %v271_v20, %v317_v61  ;;  %v365_v26 = vrot.slane %v272_v21, %v324_v12  ;;  %v447_v61 = vrot.slane %v442_v44, %v446_v59 }
  0xb3   :  { %v361_v28 = vsel %vm319_vm6, %v360_v25, %v356_v27 }
  0xb4   :  { %v366_v30 = vsel %vm326_vm7, %v365_v26, %v361_v28 }
  0xb5   :  { %v368_v31 = vsel %vm367_vm8, %v366_v30, %v327_v29 }
  0xb6   :  { %v369_v32 = vpack.c.b16 %v368_v31, %v368_v31 }
  0xb8   :  { %591 = vmatmul.mubr.msk.bf16.vlgmr.msra.gmra.mxu0 %vm394_vm9, %v369_v32 }
 0x178   :  { %v432_v36 = vpop.f32.mrf.mxu0 }
 0x179   :  { %v438_v37 = vmax.f32 %v432_v36, 0.0 }
 0x17a   :  { %v592_v38 = vpop.f32.mrf.mxu0 }
 0x17b   :  { %v439_v39 = vpack.c.bf16 %v438_v37, %v438_v37 }
 0x17c   :  { %v435_v40 = vpop.f32.mrf.mxu0 }
 0x17d   :  { %575 = vmatmul.mubr.msk.bf16.vlgmr.msra.gmra.mxu1 %vm464_vm10, %v439_v39 }
 0x17e   :  { %v593_v41 = vpop.f32.mrf.mxu0 }
 0x23d   :  { %v502_v46 = vpop.f32.mrf.mxu1 }
 0x23e   :  { %v503_v62 = vadd.f32 %v502_v46, %v447_v61 }
 0x23f   :  { %v504_v47 = vpop.f32.mrf.mxu1 }
 0x240   :  { %v505_v49 = vadd.f32 %v504_v47, %v451_v45  ;;  %v509_v0 = vsub.f32 0.0, %v503_v62 }
 0x241   :  { %v506_v50 = vpop.f32.mrf.mxu1 }
 0x242   :  { %v527_v51 = vsel %vm793_vm13, %v505_v49, -inf  ;;  %v510_v63 = vsub.f32 0.0, %v505_v49  ;;  %v511_v2 = vmul.f32 1.442695, %v509_v0 }
 0x243   :  { %v507_v60 = vpop.f32.mrf.mxu1  ;;  %v530_v52 = vsel %vm528_vm14, %v527_v51, -inf }
 0x244   :  { %532 = vmax.xlane.f32.xlu0 %v530_v52  ;;  %v513_v1 = vmul.f32 1.442695, %v510_v63 }
 0x2cd   :  { %v533_v53 = vpop.xlane.xlu0 %532 }
 0x2ce   :  { %v535_v54 = vsub.f32 %v505_v49, %v533_v53 }
 0x2d0   :  { %v538_v55 = vmul.f32 1.442695, %v535_v54 }
 0x2d2   :  { %604 = vpow2.f32 %v538_v55 }
 0x2d3   :  { %606 = vpow2.f32 %v513_v1 }
 0x2d4   :  { %608 = vpow2.f32 %v511_v2 }
 0x2df   :  { %v605_v56 = vpop.eup %604 }
 0x2e0   :  { %v541_v57 = vsel %vm793_vm13, %v605_v56, 0.0  ;;  %v607_v3 = vpop.eup %606 }
 0x2e1   :  { %v543_v58 = vsel %vm528_vm14, %v541_v57, 0.0  ;;  %v609_v5 = vpop.eup %608  ;;  %v516_v6 = vadd.f32 1.0, %v607_v3 }
 0x2e2   :  { %545 = vadd.xlane.f32.xlu1 %v543_v58  ;;  %v515_v7 = vadd.f32 1.0, %v609_v5 }
 0x36b   :  { %v546_v8 = vpop.xlane.xlu1 %545 }
 0x36c   :  { %610 = vrcp.f32 %v546_v8 }
 0x36d   :  { %612 = vrcp.f32 %v516_v6 }
 0x36e   :  { %614 = vrcp.f32 %v515_v7 }
 0x379   :  { %v611_v9 = vpop.eup %610 }
 0x37a   :  { %v549_v10 = vmul.f32 %v611_v9, %v541_v57  ;;  %v613_v11 = vpop.eup %612 }
 0x37b   :  { %v615_v4 = vpop.eup %614 }
 0x37c   :  { %v551_v12 = vsel %vm793_vm13, %v549_v10, %v613_v11 }
 0x37d   :  { %v554_v13 = vcombine.low %v615_v4, %v551_v12 }
 0x37f   :  { %576 = vst.sshfl [vmem:[%s811_s4] sm:$0x33 pattern:$0x76325410] %v554_v13 }

</bundles_post_ra>
